<compile_context>
chip_gen: v6e
topology: v6e:2x2x1
jax: 0.10.0
libtpu: 0.0.40
codegen_flags: <defaults>
</compile_context>

<pallas_src>
import functools

import jax
import jax.numpy as jnp
from jax import lax
from jax.experimental import pallas as pl
from jax.experimental.pallas import tpu as pltpu

_LANES = 128
_SUBLANES = 8
_ROW_BLOCK = _LANES * _SUBLANES          # pad N (trajectory count) to a multiple of 1024
_DEF_TILE_ROWS = 2048                    # 2048 x 128 x 4B = 1 MiB per input tile
_VMEM_LIMIT = 32 * 1024 * 1024           # explicit scoped-VMEM budget (v5e default is 16 MiB)


# ----------------------------------------------------------------------------
# Kernels
# ----------------------------------------------------------------------------
def _lv_rhs_kernel(theta_ref, x0_ref, x1_ref, d0_ref, d1_ref):
    """Batched RHS.  x0/x1/d0/d1 are (tile_rows, 128) f32; theta_ref (4,) SMEM."""
    a = theta_ref[0]
    b = theta_ref[1]
    c = theta_ref[2]
    d = theta_ref[3]

    x0 = x0_ref[...]
    x1 = x1_ref[...]
    p = b * (x0 * x1)                    # shared interaction term (hoisted)
    d0_ref[...] = a * x0 - p
    d1_ref[...] = d * p - c * x1


def _lv_euler_kernel(theta_ref, x0_ref, x1_ref, y0_ref, y1_ref, *, dt, num_steps):
    """Fused forward-Euler integrator: num_steps RHS evals in ONE pallas_call."""
    a = theta_ref[0]
    b = theta_ref[1]
    c = theta_ref[2]
    d = theta_ref[3]
    dt_f = jnp.float32(dt)

    shp = x0_ref.shape
    # Fold dt/theta into per-step constants and broadcast to vregs ONCE
    # (JAX does not CSE broadcast_in_dim).
    k0 = jnp.full(shp, 1.0 + dt_f * a, jnp.float32)     # prey growth
    kc = jnp.full(shp, 1.0 - dt_f * c, jnp.float32)     # predator decay
    kb = jnp.full(shp, dt_f * b, jnp.float32)           # prey loss from interaction
    kd = jnp.full(shp, dt_f * d * b, jnp.float32)       # predator gain from interaction

    def step(_, carry):
        x0, x1 = carry                                   # tuple carry: no per-step packing
        q = x0 * x1
        return (k0 * x0 - kb * q, kc * x1 + kd * q)

    unroll = num_steps if num_steps <= 32 else 8         # bounded unroll for large step counts
    x0, x1 = lax.fori_loop(0, num_steps, step, (x0_ref[...], x1_ref[...]),
                           unroll=unroll)
    y0_ref[...] = x0
    y1_ref[...] = x1


# ----------------------------------------------------------------------------
# Wrappers
# ----------------------------------------------------------------------------
def _choose_tile_rows(rows, max_tile_rows):
    """Largest multiple of 8 dividing `rows` that is <= max_tile_rows; keeps >= 2
    grid tiles when possible (v7x megacore sharding along the 'parallel' axis)."""
    cap = min(rows, max_tile_rows)
    cap -= cap % _SUBLANES
    cap = max(cap, _SUBLANES)
    tr = cap
    while rows % tr:
        tr -= _SUBLANES
    if tr == rows and rows >= 2 * _SUBLANES and (rows // 2) % _SUBLANES == 0:
        tr = rows // 2
    return tr


def _to_rowmajor_tiles(x2d):
    """(2, N) f32 -> (x0, x1) each (R, 128) with R a multiple of 8; returns original N."""
    n = x2d.shape[1]
    n_pad = max(_ROW_BLOCK, ((n + _ROW_BLOCK - 1) // _ROW_BLOCK) * _ROW_BLOCK)
    if n_pad != n:
        # TODO(synk): ragged tail could be handled with an @pl.when-masked last
        # tile instead of a wrapper-side pad (saves one HBM round trip).
        x2d = jnp.pad(x2d, ((0, 0), (0, n_pad - n)))
    rows = n_pad // _LANES
    x0 = x2d[0].reshape(rows, _LANES)
    x1 = x2d[1].reshape(rows, _LANES)
    return x0, x1, n


def _from_rowmajor_tiles(y0, y1, n):
    out = jnp.stack([y0.reshape(-1), y1.reshape(-1)], axis=0)
    return out[:, :n]


def _run(kernel, theta, x0, x1, *, max_tile_rows=_DEF_TILE_ROWS):
    rows = x0.shape[0]
    tile_rows = _choose_tile_rows(rows, max_tile_rows)
    grid = (rows // tile_rows,)
    spec = pl.BlockSpec((tile_rows, _LANES), lambda i: (i, 0))
    out_sd = jax.ShapeDtypeStruct((rows, _LANES), jnp.float32)
    return pl.pallas_call(
        kernel,
        out_shape=(out_sd, out_sd),
        grid=grid,
        in_specs=[
            pl.BlockSpec(memory_space=pltpu.MemorySpace.SMEM),   # theta (whole array)
            spec,                                                # x0 tiles
            spec,                                                # x1 tiles
        ],
        out_specs=(spec, spec),
        compiler_params=pltpu.CompilerParams(
            dimension_semantics=("parallel",),                   # shards across TCs on v7x
            vmem_limit_bytes=_VMEM_LIMIT),
    )(theta, x0, x1)


def lotka_volterra_batched(t, x, theta, *, max_tile_rows=_DEF_TILE_ROWS):
    """RHS for N trajectories at once. x: (2, N) f32 -> (2, N) f32 derivative."""
    del t  # unused by the reference forward
    x = jnp.asarray(x, jnp.float32)
    theta = jnp.asarray(theta, jnp.float32).reshape(4)
    x0, x1, n = _to_rowmajor_tiles(x)
    d0, d1 = _run(_lv_rhs_kernel, theta, x0, x1, max_tile_rows=max_tile_rows)
    return _from_rowmajor_tiles(d0, d1, n)


def lotka_volterra(t, x, theta):
    """Pallas-backed LotkaVolterra.forward(t, x): (2,) -> (2,) derivative."""
    del t
    x = jnp.asarray(x, jnp.float32).reshape(2)
    theta = jnp.asarray(theta, jnp.float32).reshape(4)
    # Replicate the single state across one (8, 128) tile -> full unmasked store.
    x0 = jnp.full((_SUBLANES, _LANES), x[0], jnp.float32)
    x1 = jnp.full((_SUBLANES, _LANES), x[1], jnp.float32)
    d0, d1 = _run(_lv_rhs_kernel, theta, x0, x1, max_tile_rows=_SUBLANES)
    return jnp.stack([d0[0, 0], d1[0, 0]])


def lotka_volterra_integrate(x, theta, *, dt, num_steps, max_tile_rows=_DEF_TILE_ROWS):
    """Fused forward-Euler integration of N trajectories in ONE kernel launch.

    x: (2, N) initial states -> (2, N) states after num_steps Euler steps.
    """
    x = jnp.asarray(x, jnp.float32)
    theta = jnp.asarray(theta, jnp.float32).reshape(4)
    x0, x1, n = _to_rowmajor_tiles(x)
    kernel = functools.partial(_lv_euler_kernel, dt=float(dt), num_steps=int(num_steps))
    y0, y1 = _run(kernel, theta, x0, x1, max_tile_rows=max_tile_rows)
    return _from_rowmajor_tiles(y0, y1, n)


# ----------------------------------------------------------------------------
# Demo / correctness checks
# ----------------------------------------------------------------------------
if __name__ == "__main__":
    key = jax.random.PRNGKey(0)
    kx, kb_ = jax.random.split(key)

    theta = jnp.array([1.5, 1.0, 3.0, 1.0], dtype=jnp.float32)
    a, b, c, d = theta[0], theta[1], theta[2], theta[3]
    t = jnp.float32(0.0)

    # 1) Single-state forward (exact module semantics).
    x = jax.random.uniform(kx, (2,), dtype=jnp.float32) + 0.5
    y = jax.block_until_ready(lotka_volterra(t, x, theta))
    ref = jnp.array([a * x[0] - b * x[0] * x[1],
                     -c * x[1] + d * b * x[0] * x[1]], dtype=jnp.float32)
    assert y.shape == (2,) and y.dtype == jnp.float32
    assert jnp.allclose(y, ref, rtol=1e-5, atol=1e-6)

    # 2) Batched lane-dense RHS, tile-aligned N (2048 trajectories -> R=16 rows,
    #    2 parallel grid tiles of (8, 128)).
    N = 2048
    xb = jax.random.uniform(kb_, (2, N), dtype=jnp.float32) + 0.5
    yb = jax.block_until_ready(lotka_volterra_batched(t, xb, theta))
    refb = jnp.stack([a * xb[0] - b * xb[0] * xb[1],
                      -c * xb[1] + d * b * xb[0] * xb[1]], axis=0)
    assert yb.shape == (2, N)
    assert jnp.allclose(yb, refb, rtol=1e-5, atol=1e-6)

    # 3) Ragged N exercises the (documented, slower) padding path.
    Nr = 200
    xr = xb[:, :Nr]
    yr = jax.block_until_ready(lotka_volterra_batched(t, xr, theta))
    assert yr.shape == (2, Nr)
    assert jnp.allclose(yr, refb[:, :Nr], rtol=1e-5, atol=1e-6)

    # 4) Fused Euler integration: 64 RHS evaluations amortized over one launch
    #    (bounded unroll=8 inside the kernel).
    dt, num_steps = 0.01, 64
    xT = jax.block_until_ready(
        lotka_volterra_integrate(xb, theta, dt=dt, num_steps=num_steps))

    def euler_ref(xcur):
        x0r, x1r = xcur[0], xcur[1]
        for _ in range(num_steps):
            p = b * x0r * x1r
            dx0 = a * x0r - p
            dx1 = d * p - c * x1r
            x0r = x0r + dt * dx0
            x1r = x1r + dt * dx1
        return jnp.stack([x0r, x1r], axis=0)

    refT = euler_ref(xb)
    assert xT.shape == (2, N)
    assert jnp.allclose(xT, refT, rtol=1e-4, atol=1e-5)

    print("KERNEL_OK")
</pallas_src>

<mosaic_0001>
module attributes {stable_mosaic.version = 11 : i64} {
  func.func @_lv_rhs_kernel(%arg0: i32, %arg1: memref<4xf32, #tpu.memory_space<smem>>, %arg2: memref<8x128xf32, #tpu.memory_space<vmem>>, %arg3: memref<8x128xf32, #tpu.memory_space<vmem>>, %arg4: memref<8x128xf32, #tpu.memory_space<vmem>>, %arg5: memref<8x128xf32, #tpu.memory_space<vmem>>) attributes {dimension_semantics = [#tpu.dimension_semantics<parallel>], iteration_bounds = array<i64: 1>, scalar_prefetch = 0 : i64, scratch_operands = 0 : i64, tpu.core_type = #tpu.core_type<tc>, window_params = [{transform_indices = @transform_0, window_bounds = array<i64: 4>}, {transform_indices = @transform_1, window_bounds = array<i64: 8, 128>}, {transform_indices = @transform_2, window_bounds = array<i64: 8, 128>}, {transform_indices = @transform_3, window_bounds = array<i64: 8, 128>}, {transform_indices = @transform_4, window_bounds = array<i64: 8, 128>}]} {
    %c0 = arith.constant 0 : index
    %0 = memref.load %arg1[%c0] : memref<4xf32, #tpu.memory_space<smem>>
    %c1 = arith.constant 1 : index
    %1 = memref.load %arg1[%c1] : memref<4xf32, #tpu.memory_space<smem>>
    %c2 = arith.constant 2 : index
    %2 = memref.load %arg1[%c2] : memref<4xf32, #tpu.memory_space<smem>>
    %c3 = arith.constant 3 : index
    %3 = memref.load %arg1[%c3] : memref<4xf32, #tpu.memory_space<smem>>
    %c0_0 = arith.constant 0 : index
    %c0_1 = arith.constant 0 : index
    %4 = vector.load %arg2[%c0_0, %c0_1] : memref<8x128xf32, #tpu.memory_space<vmem>>, vector<8x128xf32>
    %c0_2 = arith.constant 0 : index
    %c0_3 = arith.constant 0 : index
    %5 = vector.load %arg3[%c0_2, %c0_3] : memref<8x128xf32, #tpu.memory_space<vmem>>, vector<8x128xf32>
    %6 = arith.mulf %4, %5 : vector<8x128xf32>
    %7 = vector.broadcast %1 : f32 to vector<8x128xf32>
    %8 = arith.mulf %7, %6 : vector<8x128xf32>
    %9 = vector.broadcast %0 : f32 to vector<8x128xf32>
    %10 = arith.mulf %9, %4 : vector<8x128xf32>
    %11 = arith.subf %10, %8 : vector<8x128xf32>
    %c0_4 = arith.constant 0 : index
    %c0_5 = arith.constant 0 : index
    %12 = vector.load %arg4[%c0_4, %c0_5] : memref<8x128xf32, #tpu.memory_space<vmem>>, vector<8x128xf32>
    tpu.vector_store %arg4[%c0_4, %c0_5], %11 {strides = array<i32>} : memref<8x128xf32, #tpu.memory_space<vmem>>, vector<8x128xf32>,
    %13 = vector.broadcast %3 : f32 to vector<8x128xf32>
    %14 = arith.mulf %13, %8 : vector<8x128xf32>
    %15 = vector.broadcast %2 : f32 to vector<8x128xf32>
    %16 = arith.mulf %15, %5 : vector<8x128xf32>
    %17 = arith.subf %14, %16 : vector<8x128xf32>
    %c0_6 = arith.constant 0 : index
    %c0_7 = arith.constant 0 : index
    %18 = vector.load %arg5[%c0_6, %c0_7] : memref<8x128xf32, #tpu.memory_space<vmem>>, vector<8x128xf32>
    tpu.vector_store %arg5[%c0_6, %c0_7], %17 {strides = array<i32>} : memref<8x128xf32, #tpu.memory_space<vmem>>, vector<8x128xf32>,
    return
  }
  func.func @transform_0(%arg0: i32) -> i32 {
    %c0_i32 = arith.constant 0 : i32
    %c0_i32_0 = arith.constant 0 : i32
    return %c0_i32 : i32
  }
  func.func @transform_1(%arg0: i32) -> (i32, i32) {
    %c0_i32 = arith.constant 0 : i32
    %c0_i32_0 = arith.constant 0 : i32
    return %arg0, %c0_i32 : i32, i32
  }
  func.func @transform_2(%arg0: i32) -> (i32, i32) {
    %c0_i32 = arith.constant 0 : i32
    %c0_i32_0 = arith.constant 0 : i32
    return %arg0, %c0_i32 : i32, i32
  }
  func.func @transform_3(%arg0: i32) -> (i32, i32) {
    %c0_i32 = arith.constant 0 : i32
    %c0_i32_0 = arith.constant 0 : i32
    return %arg0, %c0_i32 : i32, i32
  }
  func.func @transform_4(%arg0: i32) -> (i32, i32) {
    %c0_i32 = arith.constant 0 : i32
    %c0_i32_0 = arith.constant 0 : i32
    return %arg0, %c0_i32 : i32, i32
  }
}

</mosaic_0001>

<bundles_post_ra>
// kernel: tpu_custom_call.1
= control target key start
LH: loop header
LB: loop body
LE: loop exit
PB: predicated region body
PF: predicated region fallthrough
CT: control target
= control target key end

     0   :  { %10 = vsyncpa [#allocation5], 0  ;;  %s254_s0 = inlined_call_operand.hbm [shape: f32[4], index: 0, kind: input, shape index: {}]   ;;  %s255_s1 = inlined_call_operand.hbm [shape: f32[8,128], index: 1, kind: input, shape index: {}]   ;;  %s256_s2 = inlined_call_operand.hbm [shape: f32[8,128], index: 2, kind: input, shape index: {}]   ;;  %s257_s3 = inlined_call_operand.hbm [shape: f32[8,128], index: 3, kind: output, shape index: {0}]   ;;  %s258_s4 = inlined_call_operand.hbm [shape: f32[8,128], index: 4, kind: output, shape index: {1}]  }
   0x1   :  { %11 = vsyncpa [#allocation3], 0 }
   0x2   :  { %12 = vsyncpa [#allocation8], 0 }
   0x3   :  { %13 = vsyncpa [#allocation4], 0 }
   0x4   :  { %14 = vsyncpa [#allocation11], 0  ;;  %s209_s15 = smov [#allocation2]   ;;  %s210_s18 = smov [#allocation6]  }
   0x5   :  { %22 = dma.hbm_to_smem %s254_s0, 16, %s209_s15, [#allocation5]  }
   0x6   :  { %s29_s19 = sshll.u32 %s210_s18, 4  ;;  %s211_s20 = smov [#allocation7]   ;;  %s30_s19 = int_to_ptr.vmem [resolvable:$true] %s29_s19 }
   0x7   :  { %s39_s21 = sshll.u32 %s211_s20, 4  ;;  %s127_s22 = scalar_lea.vmem %s30_s19, 128  ;;  %s40_s21 = int_to_ptr.vmem [resolvable:$true] %s39_s21 }
   0x8   :  { %p128_p0 = scmp.ne.s32.totalorder %s30_s19, %s127_s22  ;;  %p132_p1 = scmp.lt.s32.totalorder %s30_s19, %s30_s19 }
   0x9   :  { %p133_p2 = scmp.lt.s32.totalorder %s127_s22, %s127_s22 }
   0xb   :  { %p134_p3 = por %p133_p2, %p132_p1 }
   0xd   :  { %p135_p4 = pnand %p134_p3, %p128_p0 }
   0xf   :  { %138 = shalt.err (!%p135_p4)
}
  0x10   :  { %32 = dma.hbm_to_vmem [thread:$0]  %s255_s1, 128, %s30_s19, [#allocation3]  }
  0x11   :  { %s147_s25 = scalar_lea.vmem %s40_s21, 128  ;;  %p152_p6 = scmp.lt.s32.totalorder %s40_s21, %s40_s21 }
  0x12   :  { %p148_p5 = scmp.ne.s32.totalorder %s40_s21, %s147_s25  ;;  %p153_p7 = scmp.lt.s32.totalorder %s147_s25, %s147_s25 }
  0x14   :  { %p154_p8 = por %p153_p7, %p152_p6 }
  0x16   :  { %p155_p9 = pnand %p154_p8, %p148_p5 }
  0x18   :  { %158 = shalt.err (!%p155_p9)
}
  0x19   :  { %42 = dma.hbm_to_vmem [thread:$0]  %s256_s2, 128, %s40_s21, [#allocation8]  }
  0x1a   :  { %199 = dma.done.wait [#allocation5], 16  }
  0x1b   :  { %200 = vsyncadd [#allocation5], 4294967280 }
  0x1c   :  { %201 = dma.done.wait [#allocation3], 128  }
  0x1d   :  { %202 = vsyncadd [#allocation3], 4294967168 }
  0x1e   :  { %203 = dma.done.wait [#allocation8], 128  }
  0x1f   :  { %204 = vsyncadd [#allocation8], 4294967168 }
  0x20   :  { %52 = sfence }
  0x21   :  { %s53_s1 = sld [smem:[#allocation2]]  ;;  %v57_v0 = vld [vmem:[#allocation6] sm:$0xff]  ;;  %v58_v1 = vld [vmem:[#allocation7] sm:$0xff]  ;;  %s212_s30 = smov [#allocation9]  }
  0x22   :  { %s103_s27 = sld [smem:[#allocation2 + $0x1]]  ;;  %v59_v2 = vmul.f32 %v58_v1, %v57_v0  ;;  %s78_s5 = sshll.u32 %s212_s30, 4  ;;  %s79_s5 = int_to_ptr.vmem [resolvable:$true] %s78_s5 }
  0x23   :  { %s104_s28 = sld [smem:[#allocation2 + $0x2]]  ;;  %s213_s2 = smov [#allocation10]  }
  0x24   :  { %s105_s29 = sld [smem:[#allocation2 + $0x3]]  ;;  %s88_s6 = sshll.u32 %s213_s2, 4  ;;  %s89_s6 = int_to_ptr.vmem [resolvable:$true] %s88_s6 }
  0x25   :  { %s159_s7 = scalar_lea.vmem %s79_s5, 128  ;;  %p164_p11 = scmp.lt.s32.totalorder %s79_s5, %s79_s5 }
  0x26   :  { %p160_p10 = scmp.ne.s32.totalorder %s79_s5, %s159_s7  ;;  %p165_p12 = scmp.lt.s32.totalorder %s159_s7, %s159_s7 }
  0x27   :  { %v62_v3 = vstv %s53_s1 }
  0x28   :  { %v60_v4 = vstv %s103_s27  ;;  %v63_v5 = vmul.f32 %v62_v3, %v57_v0  ;;  %p166_p13 = por %p165_p12, %p164_p11 }
  0x29   :  { %v61_v6 = vmul.f32 %v60_v4, %v59_v2  ;;  %v68_v7 = vstv %s104_s28 }
  0x2a   :  { %v66_v8 = vstv %s105_s29  ;;  %v69_v9 = vmul.f32 %v68_v7, %v58_v1  ;;  %p167_p0 = pnand %p166_p13, %p160_p10 }
  0x2b   :  { %v64_v10 = vsub.f32 %v63_v5, %v61_v6  ;;  %v67_v11 = vmul.f32 %v66_v8, %v61_v6 }
  0x2d   :  { %65 = vst [vmem:[#allocation9] sm:$0xff] %v64_v10  ;;  %v70_v12 = vsub.f32 %v67_v11, %v69_v9 }
  0x2e   :  { %170 = shalt.err (!%p167_p0)
}
  0x2f   :  { %81 = dma.vmem_to_hbm [thread:$0]  %s79_s5, 128, %s257_s3, [#allocation4]   ;;  %71 = vst [vmem:[#allocation10] sm:$0xff] %v70_v12 }
  0x30   :  { %s179_s10 = scalar_lea.vmem %s89_s6, 128  ;;  %p184_p2 = scmp.lt.s32.totalorder %s89_s6, %s89_s6 }
  0x31   :  { %p180_p1 = scmp.ne.s32.totalorder %s89_s6, %s179_s10  ;;  %p185_p3 = scmp.lt.s32.totalorder %s179_s10, %s179_s10 }
  0x33   :  { %p186_p4 = por %p185_p3, %p184_p2 }
  0x35   :  { %p187_p5 = pnand %p186_p4, %p180_p1 }
  0x37   :  { %190 = shalt.err (!%p187_p5)
}
  0x38   :  { %91 = dma.vmem_to_hbm [thread:$0]  %s89_s6, 128, %s258_s4, [#allocation11]  }
  0x39   :  { %205 = dma.done.wait [#allocation4], 128  }
  0x3a   :  { %206 = vsyncadd [#allocation4], 4294967168 }
  0x3b   :  { %207 = dma.done.wait [#allocation11], 128  }
  0x3c   :  { %208 = vsyncadd [#allocation11], 4294967168 }
  0x3d   :  { %98 = vsyncpa [#allocation3], 1 }
  0x3e   :  { %99 = vsyncpa [#allocation8], 1 }
  0x3f   :  { %100 = vsyncpa [#allocation4], 1 }
  0x40   :  { %101 = vsyncpa [#allocation11], 1 }
  0x41   :  { %102 = vsyncpa [#allocation5], 1 }

</bundles_post_ra>
